<compile_context>
chip_gen: v7x
topology: tpu7x:2x2x1
jax: 0.10.0
libtpu: 0.0.40
codegen_flags: <defaults>
</compile_context>

<pallas_src>
import functools

import jax
import jax.numpy as jnp
from jax.experimental import pallas as pl
from jax.experimental.pallas import tpu as pltpu


# ---------------------------------------------------------------------------
# Buffer construction (mirrors __init__)
# ---------------------------------------------------------------------------
def build_pe(max_len: int, n_input: int, dtype=jnp.float32):
    position = jnp.arange(0, max_len, dtype=jnp.float32)[:, None]          # (L, 1)
    div_term = jnp.exp(
        jnp.arange(0, n_input, 2, dtype=jnp.float32)
        * (-jnp.log(jnp.float32(10000.0)) / n_input)
    )                                                                      # (D/2,)
    ang = position * div_term                                              # (L, D/2)
    pe = jnp.zeros((max_len, n_input), jnp.float32)
    pe = pe.at[:, 0::2].set(jnp.sin(ang))
    pe = pe.at[:, 1::2].set(jnp.cos(ang))
    return pe[:, None, :].astype(dtype)                                    # (L, 1, D)


# ---------------------------------------------------------------------------
# Kernels (operate on lane-dense 2D views: (row_tile, batch*n_input))
# ---------------------------------------------------------------------------
def _pe_add_kernel(x_ref, pe_ref, o_ref):
    # Pure VPU broadcast-add; whole block in one shot.
    o_ref[...] = (x_ref[...] + pe_ref[...]).astype(o_ref.dtype)


def _pe_add_dropout_kernel(seed_ref, x_ref, pe_ref, o_ref, *,
                           p: float, row_tile: int, n_cols: int):
    y = x_ref[...].astype(jnp.float32) + pe_ref[...].astype(jnp.float32)
    shape = y.shape

    # Per-element uint32 hash of (seed, global flat index).  murmur3 fmix32:
    # only 32-bit int xor/shift/mul -> runs on the VPU and under interpret mode
    # (pltpu.prng_seed has no CPU lowering, which broke the previous version).
    row_off = pl.program_id(0) * row_tile
    rows = jax.lax.broadcasted_iota(jnp.int32, shape, 0) + row_off
    cols = jax.lax.broadcasted_iota(jnp.int32, shape, 1)
    idx = (rows * n_cols + cols).astype(jnp.uint32)
    h = idx ^ seed_ref[0].astype(jnp.uint32)
    h = h ^ (h >> 16)
    h = h * jnp.uint32(0x85EBCA6B)
    h = h ^ (h >> 13)
    h = h * jnp.uint32(0xC2B2AE35)
    h = h ^ (h >> 16)

    thresh = jnp.uint32(min(int(p * (2 ** 32)), 2 ** 32 - 1))
    keep = h >= thresh
    scale = 1.0 / (1.0 - p)            # static Python constant, baked at trace time
    o_ref[...] = jnp.where(keep, y * scale, 0.0).astype(o_ref.dtype)


# ---------------------------------------------------------------------------
# Wrapper (forward)
# ---------------------------------------------------------------------------
def _pick_row_tile(seq_len: int, row_bytes: int, target_bytes: int = 1 << 20) -> int:
    """Rows per block: ~1 MiB x-blocks (fits v5e 16 MiB / v7x 32 MiB scoped VMEM
    with double-buffered x/pe/out), multiple of 8 sublanes, capped at seq_len."""
    ts = max(1, target_bytes // max(row_bytes, 1))
    if ts >= seq_len:
        return seq_len
    ts = max(8, (ts // 8) * 8)
    return min(ts, seq_len)


def positional_encoding_forward(x, pe, *, dropout_p=0.0, training=False, seed=0):
    """x: (seq_len, batch, n_input); pe: (max_len, 1, n_input)."""
    seq_len, batch, n_input = x.shape
    n_cols = batch * n_input

    # Lane-dense 2D views: x[s, b, d] -> x2[s, b*D + d] (free row-major reshape);
    # pe tiled across batch so the kernel is a plain elementwise add.
    x2 = x.reshape(seq_len, n_cols)
    pe2 = jnp.tile(pe[:seq_len, 0, :], (1, batch)).astype(x.dtype)         # (S, B*D)

    row_bytes = n_cols * x.dtype.itemsize
    ts = _pick_row_tile(seq_len, row_bytes)
    grid = (pl.cdiv(seq_len, ts),)

    blk = pl.BlockSpec((ts, n_cols), lambda i, *_: (i, 0))
    out_shape = jax.ShapeDtypeStruct((seq_len, n_cols), x.dtype)
    cparams = pltpu.CompilerParams(dimension_semantics=("parallel",))
    cost = pl.CostEstimate(
        flops=2 * x.size,
        transcendentals=0,
        bytes_accessed=2 * x2.size * x2.dtype.itemsize + pe2.size * pe2.dtype.itemsize,
    )

    if training and dropout_p > 0.0:
        kernel = functools.partial(
            _pe_add_dropout_kernel, p=float(dropout_p), row_tile=ts, n_cols=n_cols
        )
        gs = pltpu.PrefetchScalarGridSpec(
            num_scalar_prefetch=1, grid=grid, in_specs=[blk, blk], out_specs=blk
        )
        seed_arr = jnp.array([seed], dtype=jnp.int32)
        out2 = pl.pallas_call(
            kernel, out_shape=out_shape, grid_spec=gs,
            compiler_params=cparams, cost_estimate=cost,
        )(seed_arr, x2, pe2)
    else:
        # eval mode: dropout is identity
        gs = pltpu.PrefetchScalarGridSpec(
            num_scalar_prefetch=0, grid=grid, in_specs=[blk, blk], out_specs=blk
        )
        out2 = pl.pallas_call(
            _pe_add_kernel, out_shape=out_shape, grid_spec=gs,
            compiler_params=cparams, cost_estimate=cost,
        )(x2, pe2)

    return out2.reshape(seq_len, batch, n_input)


# ---------------------------------------------------------------------------
# Demo / self-test
# ---------------------------------------------------------------------------
if __name__ == "__main__":
    n_input = 32
    dropout_p = 0.1
    max_len = 5000

    seq_len, batch = 8, 2
    key = jax.random.PRNGKey(0)
    x = jax.random.normal(key, (seq_len, batch, n_input), dtype=jnp.float32)

    pe = build_pe(max_len, n_input)
    ref = x + pe[:seq_len]

    # eval mode (deterministic) -- verify against pure-JAX reference
    out_eval = positional_encoding_forward(x, pe, dropout_p=dropout_p, training=False)
    out_eval = jax.block_until_ready(out_eval)
    assert out_eval.shape == x.shape and out_eval.dtype == x.dtype
    assert jnp.allclose(out_eval, ref, atol=1e-6, rtol=1e-6), "eval-mode mismatch"

    # training mode (in-kernel stochastic dropout)
    out_train = positional_encoding_forward(
        x, pe, dropout_p=dropout_p, training=True, seed=0
    )
    out_train = jax.block_until_ready(out_train)
    assert out_train.shape == x.shape and out_train.dtype == x.dtype
    scale = 1.0 / (1.0 - dropout_p)
    # every element is either exactly 0 (dropped) or ref * 1/(1-p) (kept)
    ok = (out_train == 0.0) | jnp.isclose(out_train, ref * scale, atol=1e-5, rtol=1e-5)
    assert bool(jnp.all(ok)), "train-mode dropout scaling mismatch"
    # loose sanity check on the drop rate (broken RNG would drop ~0% or ~100%)
    drop_frac = float(jnp.mean((out_train == 0.0).astype(jnp.float32)))
    assert drop_frac < 0.5, f"dropout rate implausible: {drop_frac}"

    print("KERNEL_OK")
</pallas_src>

<mosaic_0001>
module attributes {stable_mosaic.version = 11 : i64} {
  func.func @_pe_add_kernel(%arg0: i32, %arg1: memref<8x64xf32, #tpu.memory_space<vmem>>, %arg2: memref<8x64xf32, #tpu.memory_space<vmem>>, %arg3: memref<8x64xf32, #tpu.memory_space<vmem>>) attributes {dimension_semantics = [#tpu.dimension_semantics<parallel>], iteration_bounds = array<i64: 1>, scalar_prefetch = 0 : i64, scratch_operands = 0 : i64, tpu.core_type = #tpu.core_type<tc>, window_params = [{transform_indices = @transform_0, window_bounds = array<i64: 8, 64>}, {transform_indices = @transform_1, window_bounds = array<i64: 8, 64>}, {transform_indices = @transform_2, window_bounds = array<i64: 8, 64>}]} {
    %c0 = arith.constant 0 : index
    %c0_0 = arith.constant 0 : index
    %0 = vector.load %arg1[%c0, %c0_0] : memref<8x64xf32, #tpu.memory_space<vmem>>, vector<8x64xf32>
    %c0_1 = arith.constant 0 : index
    %c0_2 = arith.constant 0 : index
    %1 = vector.load %arg2[%c0_1, %c0_2] : memref<8x64xf32, #tpu.memory_space<vmem>>, vector<8x64xf32>
    %2 = arith.addf %0, %1 : vector<8x64xf32>
    %c0_3 = arith.constant 0 : index
    %c0_4 = arith.constant 0 : index
    %3 = vector.load %arg3[%c0_3, %c0_4] : memref<8x64xf32, #tpu.memory_space<vmem>>, vector<8x64xf32>
    tpu.vector_store %arg3[%c0_3, %c0_4], %2 {strides = array<i32>} : memref<8x64xf32, #tpu.memory_space<vmem>>, vector<8x64xf32>,
    return
  }
  func.func @transform_0(%arg0: i32) -> (i32, i32) {
    %c0_i32 = arith.constant 0 : i32
    %c0_i32_0 = arith.constant 0 : i32
    return %arg0, %c0_i32 : i32, i32
  }
  func.func @transform_1(%arg0: i32) -> (i32, i32) {
    %c0_i32 = arith.constant 0 : i32
    %c0_i32_0 = arith.constant 0 : i32
    return %arg0, %c0_i32 : i32, i32
  }
  func.func @transform_2(%arg0: i32) -> (i32, i32) {
    %c0_i32 = arith.constant 0 : i32
    %c0_i32_0 = arith.constant 0 : i32
    return %arg0, %c0_i32 : i32, i32
  }
}

</mosaic_0001>

<bundles_post_ra>
// kernel: tpu_custom_call.1
= control target key start
LH: loop header
LB: loop body
LE: loop exit
PB: predicated region body
PF: predicated region fallthrough
CT: control target
= control target key end

     0   :  { %7 = vsyncpa [#allocation3], 0  ;;  %s186_s0 = inlined_call_operand.hbm [shape: f32[8,64], index: 0, kind: input, shape index: {}]   ;;  %s187_s1 = inlined_call_operand.hbm [shape: f32[8,64], index: 1, kind: input, shape index: {}]   ;;  %s188_s2 = inlined_call_operand.hbm [shape: f32[8,64], index: 2, kind: output, shape index: {}]  }
   0x1   :  { %8 = vsyncpa [#allocation6], 0 }
   0x2   :  { %9 = vsyncpa [#allocation4], 0  ;;  %s132_s9 = smov [#allocation2]   ;;  %s133_s11 = smov [#allocation5]  }
   0x3   :  { %s16_s10 = sshll.u32 %s132_s9, 4  ;;  %s26_s12 = sshll.u32 %s133_s11, 4  ;;  %s17_s10 = int_to_ptr.vmem [resolvable:$true] %s16_s10  ;;  %s27_s12 = int_to_ptr.vmem [resolvable:$true] %s26_s12 }
   0x4   :  { %s60_s15 = scalar_lea.hbm %s186_s0, 128 }
   0x5   :  { %p61_p0 = scmp.ne.s32.totalorder %s186_s0, %s60_s15  ;;  %p64_p1 = scmp.lt.u32.totalorder %s60_s15, %s186_s0 }
   0x7   :  { %p66_p2 = pnand %p64_p1, %p61_p0 }
   0x9   :  { %69 = shalt.err (!%p66_p2)
}
   0xa   :  { %s70_s20 = scalar_lea.vmem %s17_s10, 128  ;;  %p75_p4 = scmp.lt.s32.totalorder %s17_s10, %s17_s10 }
   0xb   :  { %p71_p3 = scmp.ne.s32.totalorder %s17_s10, %s70_s20  ;;  %p76_p5 = scmp.lt.s32.totalorder %s70_s20, %s70_s20 }
   0xd   :  { %p77_p6 = por %p76_p5, %p75_p4 }
   0xf   :  { %p78_p7 = pnand %p77_p6, %p71_p3 }
  0x11   :  { %81 = shalt.err (!%p78_p7)
}
  0x12   :  { %19 = dma.hbm_to_vmem [thread:$0]  %s186_s0, 128, %s17_s10, [#allocation3]  }
  0x13   :  { %s82_s25 = scalar_lea.hbm %s187_s1, 128 }
  0x14   :  { %p83_p8 = scmp.ne.s32.totalorder %s187_s1, %s82_s25  ;;  %p86_p9 = scmp.lt.u32.totalorder %s82_s25, %s187_s1 }
  0x16   :  { %p88_p10 = pnand %p86_p9, %p83_p8 }
  0x18   :  { %91 = shalt.err (!%p88_p10)
}
  0x19   :  { %s92_s30 = scalar_lea.vmem %s27_s12, 128  ;;  %p97_p12 = scmp.lt.s32.totalorder %s27_s12, %s27_s12 }
  0x1a   :  { %p93_p11 = scmp.ne.s32.totalorder %s27_s12, %s92_s30  ;;  %p98_p13 = scmp.lt.s32.totalorder %s92_s30, %s92_s30 }
  0x1c   :  { %p99_p0 = por %p98_p13, %p97_p12 }
  0x1e   :  { %p100_p1 = pnand %p99_p0, %p93_p11 }
  0x20   :  { %103 = shalt.err (!%p100_p1)
}
  0x21   :  { %29 = dma.hbm_to_vmem [thread:$0]  %s187_s1, 128, %s27_s12, [#allocation6]  }
  0x22   :  { %126 = dma.done.wait [#allocation3], 128  }
  0x23   :  { %127 = vsyncadd [#allocation3], 4294967168 }
  0x24   :  { %128 = dma.done.wait [#allocation6], 128  }
  0x25   :  { %129 = vsyncadd [#allocation6], 4294967168  ;;  %s134_s4 = smov [#allocation7]   ;;  %v36_v0 = vld [vmem:[#allocation2] sm:$0xff]  ;;  %v37_v1 = vld [vmem:[#allocation5] sm:$0xff]  ;;  %vm39_vm0 = vcmask 523264  }
  0x26   :  { %s47_s5 = sshll.u32 %s134_s4, 4  ;;  %v38_v2 = vadd.f32 %v37_v1, %v36_v0  ;;  %s48_s5 = int_to_ptr.vmem [resolvable:$true] %s47_s5 }
  0x27   :  { %s104_s6 = scalar_lea.vmem %s48_s5, 128  ;;  %p109_p3 = scmp.lt.s32.totalorder %s48_s5, %s48_s5 }
  0x28   :  { %40 = vst.msk [vmem:[#allocation7] sm:$0xff] %vm39_vm0, %v38_v2  ;;  %p105_p2 = scmp.ne.s32.totalorder %s48_s5, %s104_s6  ;;  %p110_p4 = scmp.lt.s32.totalorder %s104_s6, %s104_s6 }
  0x2a   :  { %p111_p5 = por %p110_p4, %p109_p3 }
  0x2c   :  { %p112_p6 = pnand %p111_p5, %p105_p2 }
  0x2e   :  { %115 = shalt.err (!%p112_p6)
}
  0x2f   :  { %s116_s8 = scalar_lea.hbm %s188_s2, 128 }
  0x30   :  { %p117_p7 = scmp.ne.s32.totalorder %s188_s2, %s116_s8  ;;  %p120_p8 = scmp.lt.u32.totalorder %s116_s8, %s188_s2 }
  0x32   :  { %p122_p9 = pnand %p120_p8, %p117_p7 }
  0x34   :  { %125 = shalt.err (!%p122_p9)
}
  0x35   :  { %50 = dma.vmem_to_hbm [thread:$0]  %s48_s5, 128, %s188_s2, [#allocation4]  }
  0x36   :  { %130 = dma.done.wait [#allocation4], 128  }
  0x37   :  { %131 = vsyncadd [#allocation4], 4294967168 }
  0x38   :  { %54 = vsyncpa [#allocation3], 1 }
  0x39   :  { %55 = vsyncpa [#allocation6], 1 }
  0x3a   :  { %56 = vsyncpa [#allocation4], 1 }

</bundles_post_ra>
